<compile_context>
chip_gen: v7x
topology: tpu7x:2x2x1
jax: 0.10.0
libtpu: 0.0.40
codegen_flags: <defaults>
</compile_context>

<pallas_src>
import functools
import math

import jax
import jax.numpy as jnp
from jax import lax
from jax.experimental import pallas as pl
from jax.experimental.pallas import tpu as pltpu


def _round_up(x, m):
    return ((x + m - 1) // m) * m


# ---------------------------------------------------------------------------
# Pass 1: fused [scaled-Q | K | V(+ones)] projection over the whole sequence.
# ---------------------------------------------------------------------------
def _qkv_proj_kernel(x_ref, w_ref, b_ref, q_ref, k_ref, v_ref):
    y = jnp.dot(x_ref[...], w_ref[...],
                preferred_element_type=jnp.float32) + b_ref[...]
    dqk = q_ref.shape[-1]
    # All split points are multiples of 128 -> tile-aligned, no relayout copies.
    q_ref[...] = y[:, :dqk].astype(q_ref.dtype)
    k_ref[...] = y[:, dqk:2 * dqk].astype(k_ref.dtype)
    v_ref[...] = y[:, 2 * dqk:].astype(v_ref.dtype)


# ---------------------------------------------------------------------------
# Pass 2: flash attention (online softmax) over the cached projections.
# ---------------------------------------------------------------------------
def _flash_attn_kernel(q_ref, k_ref, v_ref, o_ref, m_sc, acc_sc, *, ones_col):
    ki = pl.program_id(2)

    @pl.when(ki == 0)
    def _():
        m_sc[...] = jnp.full_like(m_sc, -jnp.inf)
        acc_sc[...] = jnp.zeros_like(acc_sc)

    # scores: contract the last (padded head) dims directly, no explicit k.T
    s = lax.dot_general(q_ref[...], k_ref[...],
                        dimension_numbers=(((1,), (1,)), ((), ())),
                        preferred_element_type=jnp.float32)        # (TQ, TK)

    m_prev = m_sc[...]
    m_new = jnp.maximum(m_prev, jnp.max(s, axis=-1, keepdims=True))
    alpha = jnp.exp(m_prev - m_new)
    p = jnp.exp(s - m_new).astype(v_ref.dtype)                      # bf16 probs
    # v carries a ones column at `ones_col`, so this single MXU pass updates
    # both the output accumulator and the softmax denominator.
    acc_sc[...] = alpha * acc_sc[...] + jnp.dot(
        p, v_ref[...], preferred_element_type=jnp.float32)
    m_sc[...] = m_new

    @pl.when(ki == pl.num_programs(2) - 1)
    def _():
        acc = acc_sc[...]
        l = acc[:, ones_col:ones_col + 1]                 # row-sums column
        o_ref[...] = (acc * pl.reciprocal(l)).astype(o_ref.dtype)


def attention_head(hidden_state, wq, bq, wk, bk, wv, bv, *,
                   q_tile=256, kv_tile=512, proj_tile=256,
                   matmul_dtype=jnp.bfloat16):
    """hidden_state: (B, S, E); w*: (E, D); b*: (D,). Returns (B, S, D)."""
    B, S, E = hidden_state.shape
    D = wq.shape[1]

    Dqk = max(_round_up(D, 128), 128)        # lane-dense padded head dim for q/k
    Dv = max(_round_up(D + 1, 128), 128)     # +1 lane reserved for the ones column
    scale = 1.0 / math.sqrt(D)

    f32 = jnp.float32
    # Fused, padded projection weights/bias: [scaled-Q | K | V, ones-col].
    w_fused = jnp.zeros((E, 2 * Dqk + Dv), f32)
    w_fused = w_fused.at[:, :D].set(wq.astype(f32) * scale)
    w_fused = w_fused.at[:, Dqk:Dqk + D].set(wk.astype(f32))
    w_fused = w_fused.at[:, 2 * Dqk:2 * Dqk + D].set(wv.astype(f32))
    b_fused = jnp.zeros((1, 2 * Dqk + Dv), f32)
    b_fused = b_fused.at[0, :D].set(bq.astype(f32) * scale)
    b_fused = b_fused.at[0, Dqk:Dqk + D].set(bk.astype(f32))
    b_fused = b_fused.at[0, 2 * Dqk:2 * Dqk + D].set(bv.astype(f32))
    b_fused = b_fused.at[0, 2 * Dqk + D].set(1.0)        # ones column for row-sums

    x = hidden_state.astype(matmul_dtype)
    w_fused = w_fused.astype(matmul_dtype)               # bias stays f32

    # ---- pass 1: project the whole sequence exactly once ----
    TP = min(S, proj_tile)
    assert S % TP == 0, "seq_len must divide evenly into the projection tile"
    q, k, v = pl.pallas_call(
        _qkv_proj_kernel,
        out_shape=(jax.ShapeDtypeStruct((B, S, Dqk), matmul_dtype),
                   jax.ShapeDtypeStruct((B, S, Dqk), matmul_dtype),
                   jax.ShapeDtypeStruct((B, S, Dv), matmul_dtype)),
        grid_spec=pltpu.PrefetchScalarGridSpec(
            num_scalar_prefetch=0,
            grid=(B, S // TP),
            in_specs=[
                pl.BlockSpec((pl.Squeezed(), TP, E), lambda b, i: (b, i, 0)),
                pl.BlockSpec((E, 2 * Dqk + Dv), lambda b, i: (0, 0)),
                pl.BlockSpec((1, 2 * Dqk + Dv), lambda b, i: (0, 0)),
            ],
            out_specs=[
                pl.BlockSpec((pl.Squeezed(), TP, Dqk), lambda b, i: (b, i, 0)),
                pl.BlockSpec((pl.Squeezed(), TP, Dqk), lambda b, i: (b, i, 0)),
                pl.BlockSpec((pl.Squeezed(), TP, Dv), lambda b, i: (b, i, 0)),
            ],
        ),
        compiler_params=pltpu.CompilerParams(
            dimension_semantics=("parallel", "parallel"),
            vmem_limit_bytes=32 * 1024 * 1024,
        ),
    )(x, w_fused, b_fused)

    # ---- pass 2: flash attention over the cached q/k/v ----
    TQ = min(S, q_tile)
    # v7x has 2 TensorCores: make sure there are >= 2 parallel grid steps.
    while B * (S // TQ) < 2 and TQ % 2 == 0 and TQ > 8:
        TQ //= 2
    TK = min(S, kv_tile)
    # TODO(synk): ragged S (not a multiple of the tiles) would need masking in
    #             the online-softmax max/sum; unsupported here.
    assert S % TQ == 0 and S % TK == 0, "seq_len must divide evenly into tiles"

    kernel = functools.partial(_flash_attn_kernel, ones_col=D)
    out_p = pl.pallas_call(
        kernel,
        out_shape=jax.ShapeDtypeStruct((B, S, Dv), hidden_state.dtype),
        grid_spec=pltpu.PrefetchScalarGridSpec(
            num_scalar_prefetch=0,
            grid=(B, S // TQ, S // TK),
            in_specs=[
                pl.BlockSpec((pl.Squeezed(), TQ, Dqk), lambda b, qi, ki: (b, qi, 0)),
                pl.BlockSpec((pl.Squeezed(), TK, Dqk), lambda b, qi, ki: (b, ki, 0)),
                pl.BlockSpec((pl.Squeezed(), TK, Dv), lambda b, qi, ki: (b, ki, 0)),
            ],
            out_specs=pl.BlockSpec((pl.Squeezed(), TQ, Dv),
                                   lambda b, qi, ki: (b, qi, 0)),
            scratch_shapes=[
                pltpu.VMEM((TQ, 1), jnp.float32),    # running max m
                pltpu.VMEM((TQ, Dv), jnp.float32),   # output (+ row-sum col) accum
            ],
        ),
        compiler_params=pltpu.CompilerParams(
            dimension_semantics=("parallel", "parallel", "arbitrary"),
            vmem_limit_bytes=32 * 1024 * 1024,
        ),
    )(q, k, v)

    # Drop the lane padding (columns >= D, including the row-sum column at D).
    return out_p[..., :D]


if __name__ == "__main__":
    # Small, deterministic shapes consistent with the module.
    B, S, E, D = 2, 8, 32, 16          # batch, seq_len, embed_dim, head_dim

    key = jax.random.PRNGKey(0)
    k_x, k_wq, k_bq, k_wk, k_bk, k_wv, k_bv = jax.random.split(key, 7)

    x = jax.random.normal(k_x, (B, S, E), dtype=jnp.float32)
    bound = 1.0 / math.sqrt(E)
    wq = jax.random.uniform(k_wq, (E, D), minval=-bound, maxval=bound, dtype=jnp.float32)
    bq = jax.random.uniform(k_bq, (D,), minval=-bound, maxval=bound, dtype=jnp.float32)
    wk = jax.random.uniform(k_wk, (E, D), minval=-bound, maxval=bound, dtype=jnp.float32)
    bk = jax.random.uniform(k_bk, (D,), minval=-bound, maxval=bound, dtype=jnp.float32)
    wv = jax.random.uniform(k_wv, (E, D), minval=-bound, maxval=bound, dtype=jnp.float32)
    bv = jax.random.uniform(k_bv, (D,), minval=-bound, maxval=bound, dtype=jnp.float32)

    out = attention_head(x, wq, bq, wk, bk, wv, bv)
    out = jax.block_until_ready(out)

    # Pure-JAX f32 reference check.
    def ref(x):
        q = x @ wq + bq
        k = x @ wk + bk
        v = x @ wv + bv
        s = jnp.einsum("bqd,bkd->bqk", q, k) / math.sqrt(D)
        w = jax.nn.softmax(s, axis=-1)
        return jnp.einsum("bqk,bkd->bqd", w, v)

    expected = ref(x)
    assert out.shape == (B, S, D)
    # bf16 MXU operands -> relaxed tolerance vs the f32 reference.
    assert jnp.allclose(out, expected, atol=5e-2, rtol=5e-2), (
        float(jnp.max(jnp.abs(out - expected))))
    print("KERNEL_OK")
</pallas_src>

<mosaic_0001>
module attributes {stable_mosaic.version = 11 : i64} {
  func.func @_qkv_proj_kernel(%arg0: i32, %arg1: i32, %arg2: memref<1x8x32xbf16, #tpu.memory_space<vmem>>, %arg3: memref<32x384xbf16, #tpu.memory_space<vmem>>, %arg4: memref<1x384xf32, #tpu.memory_space<vmem>>, %arg5: memref<1x8x128xbf16, #tpu.memory_space<vmem>>, %arg6: memref<1x8x128xbf16, #tpu.memory_space<vmem>>, %arg7: memref<1x8x128xbf16, #tpu.memory_space<vmem>>) attributes {dimension_semantics = [#tpu.dimension_semantics<parallel>, #tpu.dimension_semantics<parallel>], iteration_bounds = array<i64: 2, 1>, scalar_prefetch = 0 : i64, scratch_operands = 0 : i64, tpu.core_type = #tpu.core_type<tc>, window_params = [{transform_indices = @transform_0, window_bounds = array<i64: 1, 8, 32>}, {pipeline_mode = #tpu.pipeline_mode<synchronous>, transform_indices = @transform_1, window_bounds = array<i64: 32, 384>}, {pipeline_mode = #tpu.pipeline_mode<synchronous>, transform_indices = @transform_2, window_bounds = array<i64: 1, 384>}, {transform_indices = @transform_3, window_bounds = array<i64: 1, 8, 128>}, {transform_indices = @transform_4, window_bounds = array<i64: 1, 8, 128>}, {transform_indices = @transform_5, window_bounds = array<i64: 1, 8, 128>}]} {
    %c0 = arith.constant 0 : index
    %c0_0 = arith.constant 0 : index
    %c0_1 = arith.constant 0 : index
    %0 = vector.load %arg2[%c0, %c0_0, %c0_1] : memref<1x8x32xbf16, #tpu.memory_space<vmem>>, vector<1x8x32xbf16>
    %1 = vector.shape_cast %0 : vector<1x8x32xbf16> to vector<8x32xbf16>
    %c0_2 = arith.constant 0 : index
    %c0_3 = arith.constant 0 : index
    %2 = vector.load %arg3[%c0_2, %c0_3] : memref<32x384xbf16, #tpu.memory_space<vmem>>, vector<32x384xbf16>
    %cst = arith.constant dense<0.000000e+00> : vector<8x384xf32>
    %3 = tpu.matmul %1, %2, %cst {dimension_numbers = #tpu.dot_dimension_numbers<[1], [0], [0], [1], [0, 0, 1, 1], [], []>} : vector<8x32xbf16>, vector<32x384xbf16>, vector<8x384xf32> -> vector<8x384xf32>
    %c0_4 = arith.constant 0 : index
    %c0_5 = arith.constant 0 : index
    %4 = vector.load %arg4[%c0_4, %c0_5] : memref<1x384xf32, #tpu.memory_space<vmem>>, vector<1x384xf32>
    %5 = vector.broadcast %4 : vector<1x384xf32> to vector<8x384xf32>
    %6 = arith.addf %3, %5 : vector<8x384xf32>
    %7 = vector.extract_strided_slice %6 {offsets = [0, 0], sizes = [8, 128], strides = [1, 1]} : vector<8x384xf32> to vector<8x128xf32>
    %8 = arith.truncf %7 : vector<8x128xf32> to vector<8x128xbf16>
    %c0_6 = arith.constant 0 : index
    %c0_7 = arith.constant 0 : index
    %c0_8 = arith.constant 0 : index
    %9 = vector.load %arg5[%c0_6, %c0_7, %c0_8] : memref<1x8x128xbf16, #tpu.memory_space<vmem>>, vector<1x8x128xbf16>
    %10 = vector.shape_cast %9 : vector<1x8x128xbf16> to vector<8x128xbf16>
    %11 = vector.shape_cast %8 : vector<8x128xbf16> to vector<1x8x128xbf16>
    tpu.vector_store %arg5[%c0_6, %c0_7, %c0_8], %11 {strides = array<i32>} : memref<1x8x128xbf16, #tpu.memory_space<vmem>>, vector<1x8x128xbf16>,
    %12 = vector.extract_strided_slice %6 {offsets = [0, 128], sizes = [8, 128], strides = [1, 1]} : vector<8x384xf32> to vector<8x128xf32>
    %13 = arith.truncf %12 : vector<8x128xf32> to vector<8x128xbf16>
    %c0_9 = arith.constant 0 : index
    %c0_10 = arith.constant 0 : index
    %c0_11 = arith.constant 0 : index
    %14 = vector.load %arg6[%c0_9, %c0_10, %c0_11] : memref<1x8x128xbf16, #tpu.memory_space<vmem>>, vector<1x8x128xbf16>
    %15 = vector.shape_cast %14 : vector<1x8x128xbf16> to vector<8x128xbf16>
    %16 = vector.shape_cast %13 : vector<8x128xbf16> to vector<1x8x128xbf16>
    tpu.vector_store %arg6[%c0_9, %c0_10, %c0_11], %16 {strides = array<i32>} : memref<1x8x128xbf16, #tpu.memory_space<vmem>>, vector<1x8x128xbf16>,
    %17 = vector.extract_strided_slice %6 {offsets = [0, 256], sizes = [8, 128], strides = [1, 1]} : vector<8x384xf32> to vector<8x128xf32>
    %18 = arith.truncf %17 : vector<8x128xf32> to vector<8x128xbf16>
    %c0_12 = arith.constant 0 : index
    %c0_13 = arith.constant 0 : index
    %c0_14 = arith.constant 0 : index
    %19 = vector.load %arg7[%c0_12, %c0_13, %c0_14] : memref<1x8x128xbf16, #tpu.memory_space<vmem>>, vector<1x8x128xbf16>
    %20 = vector.shape_cast %19 : vector<1x8x128xbf16> to vector<8x128xbf16>
    %21 = vector.shape_cast %18 : vector<8x128xbf16> to vector<1x8x128xbf16>
    tpu.vector_store %arg7[%c0_12, %c0_13, %c0_14], %21 {strides = array<i32>} : memref<1x8x128xbf16, #tpu.memory_space<vmem>>, vector<1x8x128xbf16>,
    return
  }
  func.func @transform_0(%arg0: i32, %arg1: i32) -> (i32, i32, i32) {
    %c0_i32 = arith.constant 0 : i32
    %c0_i32_0 = arith.constant 0 : i32
    return %arg0, %arg1, %c0_i32 : i32, i32, i32
  }
  func.func @transform_1(%arg0: i32, %arg1: i32) -> (i32, i32) {
    %c0_i32 = arith.constant 0 : i32
    %c0_i32_0 = arith.constant 0 : i32
    %c0_i32_1 = arith.constant 0 : i32
    return %c0_i32, %c0_i32_0 : i32, i32
  }
  func.func @transform_2(%arg0: i32, %arg1: i32) -> (i32, i32) {
    %c0_i32 = arith.constant 0 : i32
    %c0_i32_0 = arith.constant 0 : i32
    %c0_i32_1 = arith.constant 0 : i32
    return %c0_i32, %c0_i32_0 : i32, i32
  }
  func.func @transform_3(%arg0: i32, %arg1: i32) -> (i32, i32, i32) {
    %c0_i32 = arith.constant 0 : i32
    %c0_i32_0 = arith.constant 0 : i32
    return %arg0, %arg1, %c0_i32 : i32, i32, i32
  }
  func.func @transform_4(%arg0: i32, %arg1: i32) -> (i32, i32, i32) {
    %c0_i32 = arith.constant 0 : i32
    %c0_i32_0 = arith.constant 0 : i32
    return %arg0, %arg1, %c0_i32 : i32, i32, i32
  }
  func.func @transform_5(%arg0: i32, %arg1: i32) -> (i32, i32, i32) {
    %c0_i32 = arith.constant 0 : i32
    %c0_i32_0 = arith.constant 0 : i32
    return %arg0, %arg1, %c0_i32 : i32, i32, i32
  }
}

</mosaic_0001>

<bundles_post_ra>
// kernel: tpu_custom_call.1
= control target key start
LH: loop header
LB: loop body
LE: loop exit
PB: predicated region body
PF: predicated region fallthrough
CT: control target
= control target key end

     0   :  { %s1318_s0 = inlined_call_operand.hbm [shape: bf16[2,8,32], index: 0, kind: input, shape index: {}]   ;;  %s1319_s1 = inlined_call_operand.hbm [shape: bf16[32,384], index: 1, kind: input, shape index: {}]   ;;  %s1320_s2 = inlined_call_operand.vmem [shape: f32[1,384], index: 2, kind: input, shape index: {}]   ;;  %s1321_s3 = inlined_call_operand.hbm [shape: bf16[2,8,128], index: 3, kind: output, shape index: {0}]   ;;  %s1322_s4 = inlined_call_operand.hbm [shape: bf16[2,8,128], index: 4, kind: output, shape index: {1}]   ;;  %s1323_s5 = inlined_call_operand.hbm [shape: bf16[2,8,128], index: 5, kind: output, shape index: {2}]  }
   0x1   :  { %1328 = sst [smem:[#allocation15_spill]] %s1318_s0 }
   0x2   :  { %1329 = sst [smem:[#allocation16_spill]] %s1319_s1 }
   0x3   :  { %11 = vsyncpa [#allocation3], 0 }
   0x4   :  { %13 = vsyncpa [#allocation3 + $0x1], 0 }
   0x5   :  { %14 = vsyncpa [#allocation6], 0 }
   0x6   :  { %15 = vsyncpa [#allocation4], 0 }
   0x7   :  { %17 = vsyncpa [#allocation4 + $0x1], 0 }
   0x8   :  { %18 = vsyncpa [#allocation9], 0 }
   0x9   :  { %20 = vsyncpa [#allocation9 + $0x1], 0  ;;  %s1032_s18 = smov 0   ;;  %s1034_s19 = smov 0  }
   0xa   :  { %s1036_s20 = smov 0   ;;  %s1038_s21 = smov 0  }
   0xb   :  { %s1040_s22 = smov 0   ;;  %s1042_s23 = smov 0  }
   0xc LB: > { %s1063_s24 = sadd.s32 4294967295, %s990_s23   ;;  %s1327_s25 = sadd.s32 4294967294, %s990_s23   ;;  %s990_s23 = sphi %s1042_s23, %s26_s23   ;;  %s986_s22 = sphi %s1040_s22, %s1352_s22   ;;  %s982_s21 = sphi %s1038_s21, %s1351_s21   ;;  %s978_s20 = sphi %s1036_s20, %s1350_s20   ;;  %s974_s19 = sphi %s1034_s19, %s1349_s19   ;;  %s970_s18 = sphi %s1032_s18, %s1348_s18  }
   0xd   : > { %p60_p0 = scmp.ne.s32.totalorder %s974_s19, %s970_s18  ;;  %p1324_p1 = scmp.eq.s32.totalorder %s1063_s24, 0 }
   0xe   : > { %p134_p3 = scmp.eq.s32.totalorder %s1327_s25, 1  ;;  %p652_p5 = scmp.ge.s32.totalorder %s990_s23, 1 }
   0xf   : > { %p1074_p4 = por %p1324_p1, %p60_p0  ;;  %p197_p7 = scmp.lt.s32.totalorder %s990_s23, 3 }
  0x10   : > { %p1079_p6 = por %p134_p3, %p60_p0  ;;  %s992_s29 = smov [#allocation5]  }
  0x11   : > { %s1330_s26 = scalar_select %p1074_p4, 1, 0 }
  0x12   : > { %s1331_s27 = scalar_select %p1079_p6, 1, 0 }
  0x13   : > { %p1084_p8 = pnand %p652_p5, %p197_p7  ;;  %s209_s30 = sshll.u32 %s992_s29, 4  ;;  %s210_s30 = int_to_ptr.vmem [resolvable:$true] %s209_s30 }
  0x14   : > { %s38_s7 = sadd.s32 1, %s986_s22  ;;  %s1334_s1 = sld [smem:[#allocation16_spill]] }
  0x15   : > { %s1332_s28 = scalar_select %p1084_p8, 1, 0 }
  0x16   : > { %p702_p9 = pneg %p1084_p8 }
  0x18   : > { %p1093_p11 = pnand %p702_p9, %p1324_p1 }
  0x1a   : > { %s786_s10 = scalar_lea.hbm %s1334_s1, 768  ;;  %p788_p13 = pneg %p1093_p11 }
  0x1b   : > { %p787_p12 = scmp.ne.s32.totalorder %s1334_s1, %s786_s10  ;;  %p793_p5 = scmp.lt.u32.totalorder %s786_s10, %s1334_s1 }
  0x1d   : > { %p789_p0 = pnand %p788_p13, %p787_p12 }
  0x1f   : > { %p790_p3 = pneg %p789_p0 }
  0x21   : > { %p795_p7 = pnand %p793_p5, %p790_p3 }
  0x23   : > { %798 = shalt.err (!%p795_p7)
}
  0x24   : > { %s799_s15 = scalar_lea.vmem %s210_s30, 768  ;;  %p807_p2 = scmp.lt.s32.totalorder %s210_s30, %s210_s30 }
  0x25   : > { %p800_p9 = scmp.ne.s32.totalorder %s210_s30, %s799_s15  ;;  %p808_p6 = scmp.lt.s32.totalorder %s799_s15, %s799_s15 }
  0x27   : > { %p802_p10 = pnand %p800_p9, %p788_p13  ;;  %p809_p4 = por %p808_p6, %p807_p2 }
  0x29   : > { %p803_p1 = pneg %p802_p10 }
  0x2b   : > { %p810_p8 = pnand %p809_p4, %p803_p1 }
  0x2d   : > { %813 = shalt.err (!%p810_p8)
}
  0x2e   : > { %s993_s16 = smov 192   ;;  %s994_s17 = smov 12  }
  0x2f   : > { %705 = dma.hbm_to_vmem [thread:$0]  (!%p1093_p11), %s1334_s1, 768, %s210_s30, [#allocation6], %s993_s16, %s993_s16, %s994_s17  }
  0x30   : > { %p40_p1 = scmp.ge.s32.totalorder %s38_s7, 2  ;;  %s47_s9 = sadd.s32 1, %s978_s20 }
  0x31   : > { %p54_p2 = scmp.ne.s32.totalorder %s978_s20, %s974_s19  ;;  %p55_p4 = scmp.eq.s32.totalorder %s990_s23, 0 }
  0x32   : > { %s1354_s7 = smov (%p40_p1, %s38_s7), 0  ;;  %p1336_p8 = scmp.eq.s32.totalorder %s1063_s24, 1 }
  0x33   : > { %p1120_p6 = por %p55_p4, %p54_p2  ;;  %s42_s6 = ssub.s32 %s986_s22, %s1354_s7 }
  0x34   : > { %p1126_p10 = por %p1336_p8, %p54_p2  ;;  %p721_p12 = scmp.lt.s32.totalorder %s990_s23, 2 }
  0x35   : > { %p45_p11 = scmp.eq.s32.totalorder %s42_s6, 0  ;;  %s226_s30 = sand.u32 1, %s978_s20  }
  0x36   : > { %s655_s12 = sshll.u32 %s226_s30, 2  ;;  %s656_s14 = sshll.u32 %s986_s22, 6 }
  0x37   : > { %s1135_s13 = scalar_select %p45_p11, %s978_s20, %s47_s9  }
  0x38   : > { %s1338_s0 = sld [smem:[#allocation15_spill]]  ;;  %s230_s29 = scalar_lea.vmem [#allocation2], %s655_s12 }
  0x39   : > { %s238_s8 = sshll.u32 %s230_s29, 4  ;;  %p1147_p13 = pnand %p721_p12, %p1120_p6  ;;  %s1143_s8 = int_to_ptr.vmem [resolvable:$true] %s238_s8 }
  0x3a   : > { %s227_s9 = scalar_lea.sflag [#allocation3], %s226_s30 }
  0x3b   : > { %p816_p3 = pneg %p1147_p13 }
  0x3e   : > { %s1141_s17 = scalar_lea.hbm %s1338_s0, %s656_s14  ;;  %s819_s15 = scalar_lea.hbm %s1338_s0, 128 }
  0x3f   : > { %s814_s25 = scalar_lea.hbm %s1141_s17, 64  ;;  %p820_p9 = scmp.lt.u32.totalorder %s1141_s17, %s1338_s0 }
  0x40   : > { %p815_p0 = scmp.ne.s32.totalorder %s1141_s17, %s814_s25  ;;  %p821_p1 = scmp.lt.u32.totalorder %s819_s15, %s814_s25 }
  0x41   : > { %p823_p4 = scmp.lt.u32.totalorder %s814_s25, %s1141_s17 }
  0x42   : > { %p817_p5 = pnand %p816_p3, %p815_p0  ;;  %p822_p2 = por %p821_p1, %p820_p9 }
  0x44   : > { %p818_p7 = pneg %p817_p5  ;;  %p824_p6 = por %p823_p4, %p822_p2 }
  0x46   : > { %p825_p8 = pnand %p824_p6, %p818_p7 }
  0x48   : > { %828 = shalt.err (!%p825_p8)
}
  0x49   : > { %s829_s30 = scalar_lea.vmem %s1143_s8, 64  ;;  %s995_s29 = smov [#allocation2]  }
  0x4a   : > { %p830_p12 = scmp.ne.s32.totalorder %s1143_s8, %s829_s30  ;;  %s834_s12 = sshll.u32 %s995_s29, 4  ;;  %s835_s12 = int_to_ptr.vmem [resolvable:$false] %s834_s12 }
  0x4b   : > { %s836_s14 = scalar_lea.vmem %s835_s12, 128  ;;  %p837_p5 = scmp.lt.s32.totalorder %s1143_s8, %s835_s12 }
  0x4c   : > { %p832_p11 = pnand %p830_p12, %p816_p3  ;;  %p838_p9 = scmp.lt.s32.totalorder %s836_s14, %s829_s30 }
  0x4e   : > { %p833_p0 = pneg %p832_p11  ;;  %p839_p1 = por %p838_p9, %p837_p5 }
  0x50   : > { %p840_p2 = pnand %p839_p1, %p833_p0 }
  0x52   : > { %843 = shalt.err (!%p840_p2)
}
  0x53   : > { %709 = dma.hbm_to_vmem [thread:$0]  (!%p1147_p13), %s1141_s17, 64, %s1143_s8, %s227_s9  }
  0x54   : > { %p1340_p7 = scmp.ne.s32.totalorder %s1332_s28, 0 }
  0x55   : > { %s1179_s25 = sand.u32 (!%p1340_p7), 1, %s974_s19   ;;  %p1341_p3 = scmp.ne.s32.totalorder (!%p1340_p7), %s1330_s26, 0 }
  0x56   : > { %247 = sbr.rel (%p1340_p7) target bundleno = 391 (0x187), region = 32  ;;  %s1182_s15 = sshll.u32 (!%p1340_p7), %s1179_s25, 2 }
  0x57   : > { %s250_s10 = scalar_lea.sflag (!%p1340_p7), [#allocation3], %s1179_s25  ;;  %s253_s16 = scalar_lea.vmem (!%p1340_p7), [#allocation2], %s1182_s15 }
  0x5d   : > { %953 = dma.done.wait (%p1341_p3), %s250_s10, 64  }
  0x5e   : > { %955 = vsyncadd (%p1341_p3), %s250_s10, 4294967232  ;;  %p1342_p13 = scmp.eq.s32.totalorder %s1063_s24, 0 }
  0x60   : > { %957 = dma.done.wait (%p1342_p13), [#allocation6], 768   ;;  %p1343_p4 = pmov %p1342_p13 }
  0x61   : > { %v996_v0 = vmov 0.0   ;;  %vm997_vm0 = vmmov 0   ;;  %v998_v1 = vmov 0   ;;  %v778_v2 = vld [vmem:[#allocation5 + $0x4] ss:$12 sps:$4 sm:$0xff]   ;;  %vm353_vm1 = vcmask 261120  }
  0x62   : > { %959 = vsyncadd (%p1343_p4), [#allocation6], 4294966528  ;;  %682 = vmatprep.subr.bf16.mxu1 %v996_v0  ;;  %686 = vmatprep.mubr.msk.bf16.mxu1 %vm997_vm0, %v996_v0  ;;  %v780_v3 = vld [vmem:[#allocation5 + $0x8] ss:$12 sps:$4 sm:$0xff]   ;;  %v781_v4 = vld [vmem:[#allocation5] ss:$12 sps:$4 sm:$0xff]   ;;  %v306_v9 = vlaneseq }
  0x63   : > { %389 = vmatprep.mubr.bf16.mxu0 %v998_v1  ;;  %357 = vmatprep.subr.bf16.mxu0 %v778_v2  ;;  %v782_v5 = vld [vmem:[#allocation5 + $0x1c] ss:$12 sps:$4 sm:$0xff]   ;;  %v784_v6 = vld [vmem:[#allocation5 + $0x20] ss:$12 sps:$4 sm:$0xff]   ;;  %v785_v7 = vld [vmem:[#allocation5 + $0x18] ss:$12 sps:$4 sm:$0xff]  }
  0x64   : > { %683 = vmatpush3.bf16.msra.mxu1 %v780_v3  ;;  %358 = vmatpush1.bf16.msra.mxu0 %v781_v4  ;;  %v295_v8 = vld [vmem:[%s253_s16] sm:$0xf]  ;;  %v307_v10 = vshrl.u32 %v306_v9, 7  ;;  %s674_s8 = sshll.u32 %s982_s21, 6  ;;  %s279_s6 = scalar_lea.vmem [#allocation7], %s1182_s15 }
  0x65   : > { %684 = vmatprep.subr.bf16.mxu1 %v996_v0  ;;  %359 = vmatprep.subr.bf16.mxu0 %v782_v5  ;;  %v304_v13 = vld [vmem:[%s1320_s2] sm:$0x7]  ;;  %s469_s9 = sshll.u32 %s279_s6, 4  ;;  %s286_s30 = scalar_lea.vmem [#allocation8], %s1182_s15  ;;  %s1207_s9 = int_to_ptr.vmem [resolvable:$true] %s469_s9 }
  0x66   : > { %v316_v11 = vsub.s32 2, %v307_v10  ;;  %v308_v12 = vsub.s32 0, %v307_v10  ;;  %v312_v14 = vsub.s32 1, %v307_v10  ;;  %s483_s29 = sshll.u32 %s286_s30, 4  ;;  %s293_s12 = scalar_lea.vmem [#allocation10], %s1182_s15  ;;  %s1214_s29 = int_to_ptr.vmem [resolvable:$true] %s483_s29 }
  0x67   : > { %s497_s14 = sshll.u32 %s293_s12, 4  ;;  %s1205_s21 = scalar_lea.hbm %s1321_s3, %s674_s8  ;;  %s1221_s14 = int_to_ptr.vmem [resolvable:$true] %s497_s14 }
  0x68   : > { %685 = vmatpush3.bf16.msra.mxu1 %v784_v6  ;;  %360 = vmatpush1.bf16.msra.mxu0 %v785_v7  ;;  %v317_v15 = vrot.slane %v304_v13, %v316_v11  ;;  %v309_v16 = vrot.slane %v304_v13, %v308_v12  ;;  %v313_v17 = vrot.slane %v304_v13, %v312_v14  ;;  %s1212_s15 = scalar_lea.hbm %s1322_s4, %s674_s8  ;;  %s1219_s10 = scalar_lea.hbm %s1323_s5, %s674_s8 }
  0x69   : > { %s445_s16 = scalar_lea.sflag [#allocation4], %s1179_s25  ;;  %s999_s26 = smov [#allocation7]  }
  0x6a   : > { %s848_s28 = sshll.u32 %s999_s26, 4  ;;  %s849_s28 = int_to_ptr.vmem [resolvable:$false] %s848_s28 }
  0x6b   : > { %687 = vmatmul.mubr.msk.bf16.vlgmr.msra.gmra.mrb[0].mxu1 %vm353_vm1, %v295_v8  ;;  %669 = vmatmul.mubr.msk.bf16.vlgmr.msra.gmra.mrb[0].mxu0 %vm353_vm1, %v295_v8  ;;  %s850_s1 = scalar_lea.vmem %s849_s28, 128  ;;  %p851_p11 = scmp.lt.s32.totalorder %s1207_s9, %s849_s28 }
 0x13e   : > { %v432_v18 = vpop.f32.mrb[0].mxu1  ;;  %v391_v20 = vpop.f32.mrb[0].mxu0 }
 0x13f   : > { %v433_v19 = vadd.f32 %v432_v18, %v317_v15  ;;  %v688_v21 = vpop.f32.mrb[1].mxu1  ;;  %v392_v22 = vadd.f32 %v391_v20, %v309_v16  ;;  %v393_v23 = vpop.f32.mrb[1].mxu0 }
 0x140   : > { %v435_v24 = vpop.f32.mrb[2].mxu1  ;;  %v394_v26 = vadd.f32 %v393_v23, %v313_v17  ;;  %v395_v27 = vpop.f32.mrb[2].mxu0 }
 0x141   : > { %v442_v25 = vpack.c.bf16 %v433_v19, %v433_v19  ;;  %v689_v28 = vpop.f32.mrb[3].mxu1  ;;  %v438_v29 = vpack.c.bf16 %v392_v22, %v392_v22  ;;  %v396_v30 = vpop.f32.mrb[3].mxu0 }
 0x142   : > { %v440_v31 = vpack.c.bf16 %v394_v26, %v394_v26 }
 0x143   : > { %443 = vst [vmem:[%s293_s12] sm:$0xf] %v442_v25  ;;  %439 = vst [vmem:[%s279_s6] sm:$0xf] %v438_v29  ;;  %s844_s12 = scalar_lea.vmem %s1207_s9, 64 }
 0x144   : > { %441 = vst [vmem:[%s286_s30] sm:$0xf] %v440_v31  ;;  %p845_p6 = scmp.ne.s32.totalorder %s1207_s9, %s844_s12  ;;  %p852_p0 = scmp.lt.s32.totalorder %s850_s1, %s844_s12 }
 0x146   : > { %p846_p8 = pnand %p845_p6, %p1126_p10  ;;  %p853_p5 = por %p852_p0, %p851_p11 }
 0x148   : > { %p847_p12 = pneg %p846_p8 }
 0x14a   : > { %p854_p9 = pnand %p853_p5, %p847_p12 }
 0x14c   : > { %857 = shalt.err (!%p854_p9)
}
 0x14d   : > { %s858_s0 = scalar_lea.hbm %s1205_s21, 64  ;;  %s862_s8 = scalar_lea.hbm %s1321_s3, 128 }
 0x14e   : > { %p859_p1 = scmp.ne.s32.totalorder %s1205_s21, %s858_s0  ;;  %p863_p3 = scmp.lt.u32.totalorder %s1205_s21, %s1321_s3 }
 0x14f   : > { %p864_p13 = scmp.lt.u32.totalorder %s862_s8, %s858_s0  ;;  %p866_p6 = scmp.lt.u32.totalorder %s858_s0, %s1205_s21 }
 0x150   : > { %p860_p2 = pnand %p859_p1, %p1126_p10 }
 0x151   : > { %p865_p4 = por %p864_p13, %p863_p3 }
 0x152   : > { %p861_p7 = pneg %p860_p2 }
 0x153   : > { %p867_p8 = por %p866_p6, %p865_p4 }
 0x155   : > { %p868_p12 = pnand %p867_p8, %p861_p7 }
 0x157   : > { %871 = shalt.err (!%p868_p12)
}
 0x158   : > { %696 = dma.vmem_to_hbm [thread:$0]  (%p1126_p10), %s1207_s9, 64, %s1205_s21, %s445_s16  }
 0x159   : > { %s1344_s1 = sand.u32 1, %s1063_s24   ;;  %s872_s26 = scalar_lea.vmem %s1214_s29, 64 }
 0x15a   : > { %s1247_s12 = scalar_lea.sflag [#allocation9], %s1344_s1  ;;  %p873_p11 = scmp.ne.s32.totalorder %s1214_s29, %s872_s26 }
 0x15b   : > { %s1000_s28 = smov [#allocation8]  }
 0x15c   : > { %p874_p0 = pnand %p873_p11, %p1126_p10  ;;  %s876_s0 = sshll.u32 %s1000_s28, 4  ;;  %s877_s0 = int_to_ptr.vmem [resolvable:$false] %s876_s0 }
 0x15d   : > { %s878_s25 = scalar_lea.vmem %s877_s0, 128  ;;  %p879_p9 = scmp.lt.s32.totalorder %s1214_s29, %s877_s0 }
 0x15e   : > { %p875_p5 = pneg %p874_p0  ;;  %p880_p1 = scmp.lt.s32.totalorder %s878_s25, %s872_s26 }
 0x160   : > { %p881_p2 = por %p880_p1, %p879_p9 }
 0x162   : > { %p882_p7 = pnand %p881_p2, %p875_p5 }
 0x164   : > { %885 = shalt.err (!%p882_p7)
}
 0x165   : > { %s886_s24 = scalar_lea.hbm %s1212_s15, 64  ;;  %s890_s16 = scalar_lea.hbm %s1322_s4, 128 }
 0x166   : > { %p887_p3 = scmp.ne.s32.totalorder %s1212_s15, %s886_s24  ;;  %p891_p6 = scmp.lt.u32.totalorder %s1212_s15, %s1322_s4 }
 0x167   : > { %p892_p8 = scmp.lt.u32.totalorder %s890_s16, %s886_s24  ;;  %p894_p11 = scmp.lt.u32.totalorder %s886_s24, %s1212_s15 }
 0x168   : > { %p888_p13 = pnand %p887_p3, %p1126_p10 }
 0x169   : > { %p893_p12 = por %p892_p8, %p891_p6 }
 0x16a   : > { %p889_p4 = pneg %p888_p13 }
 0x16b   : > { %p895_p0 = por %p894_p11, %p893_p12 }
 0x16d   : > { %p896_p5 = pnand %p895_p0, %p889_p4 }
 0x16f   : > { %899 = shalt.err (!%p896_p5)
}
 0x170   : > { %697 = dma.vmem_to_hbm [thread:$0]  (%p1126_p10), %s1214_s29, 64, %s1212_s15, %s1247_s12  }
 0x171   : > { %s900_s6 = scalar_lea.vmem %s1221_s14, 64  ;;  %s1001_s30 = smov [#allocation10]  }
 0x172   : > { %p901_p9 = scmp.ne.s32.totalorder %s1221_s14, %s900_s6  ;;  %s904_s1 = sshll.u32 %s1001_s30, 4  ;;  %s905_s1 = int_to_ptr.vmem [resolvable:$false] %s904_s1 }
 0x173   : > { %s906_s26 = scalar_lea.vmem %s905_s1, 128  ;;  %p907_p7 = scmp.lt.s32.totalorder %s1221_s14, %s905_s1 }
 0x174   : > { %p902_p1 = pnand %p901_p9, %p1126_p10  ;;  %p908_p3 = scmp.lt.s32.totalorder %s906_s26, %s900_s6 }
 0x176   : > { %p903_p2 = pneg %p902_p1  ;;  %p909_p13 = por %p908_p3, %p907_p7 }
 0x178   : > { %p910_p4 = pnand %p909_p13, %p903_p2 }
 0x17a   : > { %913 = shalt.err (!%p910_p4)
}
 0x17b   : > { %s914_s29 = scalar_lea.hbm %s1219_s10, 64  ;;  %s918_s0 = scalar_lea.hbm %s1323_s5, 128 }
 0x17c   : > { %p915_p6 = scmp.ne.s32.totalorder %s1219_s10, %s914_s29  ;;  %p919_p11 = scmp.lt.u32.totalorder %s1219_s10, %s1323_s5 }
 0x17d   : > { %p920_p0 = scmp.lt.u32.totalorder %s918_s0, %s914_s29  ;;  %p922_p9 = scmp.lt.u32.totalorder %s914_s29, %s1219_s10 }
 0x17e   : > { %p916_p8 = pnand %p915_p6, %p1126_p10 }
 0x17f   : > { %p921_p5 = por %p920_p0, %p919_p11 }
 0x180   : > { %p917_p12 = pneg %p916_p8 }
 0x181   : > { %p923_p1 = por %p922_p9, %p921_p5 }
 0x183   : > { %p924_p2 = pnand %p923_p1, %p917_p12 }
 0x185   : > { %927 = shalt.err (!%p924_p2)
}
 0x186   : > { %698 = dma.vmem_to_hbm [thread:$0]  (%p1126_p10), %s1221_s14, 64, %s1219_s10, %s1247_s12  }
 0x187 PF: > { %s509_s9 = sand.u32 1, %s970_s18   ;;  %p1345_p7 = scmp.ne.s32.totalorder %s1331_s27, 0 }
 0x188   : > { %p1346_p3 = scmp.ge.s32.totalorder %s990_s23, 2  ;;  %s510_s21 = scalar_lea.sflag [#allocation4], %s509_s9 }
 0x18a   : > { %p711_p13 = pnand %p1346_p3, %p1345_p7 }
 0x18c   : > { %961 = dma.done.wait (!%p711_p13), %s510_s21, 64  }
 0x18d   : > { %963 = vsyncadd (!%p711_p13), %s510_s21, 4294967232  ;;  %s1347_s16 = sadd.s32 4294967294, %s990_s23  }
 0x18e   : > { %s518_s17 = sand.u32 1, %s1347_s16  }
 0x18f   : > { %s519_s8 = scalar_lea.sflag [#allocation9], %s518_s17 }
 0x190   : > { %965 = dma.done.wait (!%p711_p13), %s519_s8, 128  }
 0x191   : > { %967 = vsyncadd (!%p711_p13), %s519_s8, 4294967168  ;;  %s26_s23 = sadd.s32 1, %s990_s23   ;;  %s1348_s18 = smov %s974_s19 }
 0x192   : > { %p23_p10 = scmp.ge.s32.totalorder %s26_s23, 4   ;;  %s1349_s19 = smov %s978_s20 }
 0x193   : > { %s1350_s20 = smov %s1135_s13  ;;  %s1351_s21 = smov %s986_s22 }
 0x194   : > { %s1352_s22 = smov %s1354_s7  ;;  %25 = sbr.rel (!%p23_p10) target bundleno = 12 (0xc), region = 113 }
 0x19b   :  { %533 = vsyncpa [#allocation3], 1 }
 0x19c   :  { %535 = vsyncpa [#allocation3 + $0x1], 1 }
 0x19d   :  { %536 = vsyncpa [#allocation6], 1 }
 0x19e   :  { %537 = vsyncpa [#allocation4], 1 }
 0x19f   :  { %539 = vsyncpa [#allocation4 + $0x1], 1 }
 0x1a0   :  { %540 = vsyncpa [#allocation9], 1 }
 0x1a1   :  { %542 = vsyncpa [#allocation9 + $0x1], 1 }

</bundles_post_ra>
